<compile_context>
chip_gen: v7x
topology: tpu7x:2x2x1
jax: 0.10.0
libtpu: 0.0.40
codegen_flags: <defaults>
</compile_context>

<pallas_src>
import functools

import jax
import jax.numpy as jnp
from jax import lax
from jax.experimental import pallas as pl
from jax.experimental.pallas import tpu as pltpu


def _mse_kernel(s_ref, t_ref, o_ref, acc_ref, *, rows, tile_rows, cols,
                inner, fold, mask_tail):
    """Accumulate sum((s - t)^2) for one parallel chunk; chunk sum in epilogue."""
    p = pl.program_id(0)     # parallel chunk (maps to TCs on v7x)
    i = pl.program_id(1)     # sequential block inside the chunk

    @pl.when(i == 0)
    def _():
        acc_ref[...] = jnp.zeros_like(acc_ref)

    # First (global) row of this block in the lane-dense 2-D view.
    row_base = (p * inner + i) * tile_rows

    def block_partial(masked):
        # Partial sum of (s - t)^2 for this block, kept register-resident.
        # f32 accumulation (accurate for bf16 inputs; matches f32 inputs).
        if fold:
            nsub = tile_rows // 8

            def body(k, carry):
                r0 = pl.multiple_of(k * 8, 8)
                d = (s_ref[pl.ds(r0, 8), :].astype(jnp.float32)
                     - t_ref[pl.ds(r0, 8), :].astype(jnp.float32))
                if masked:
                    rid = (lax.broadcasted_iota(jnp.int32, d.shape, 0)
                           + row_base + k * 8)
                    d = jnp.where(rid < rows, d, 0.0)
                return carry + d * d

            unroll = True if nsub <= 8 else 8
            return lax.fori_loop(0, nsub, body,
                                 jnp.zeros((8, cols), jnp.float32),
                                 unroll=unroll)
        else:
            # Small single-block case (tile_rows not a multiple of 8).
            d = s_ref[...].astype(jnp.float32) - t_ref[...].astype(jnp.float32)
            if masked:
                rid = lax.broadcasted_iota(jnp.int32, d.shape, 0) + row_base
                d = jnp.where(rid < rows, d, 0.0)
            return d * d

    if mask_tail:
        # Only the very last global block can hang past `rows`; keep the mask
        # (iota + compare + select) off the steady-state path.
        is_tail = jnp.logical_and(p == pl.num_programs(0) - 1,
                                  i == pl.num_programs(1) - 1)

        @pl.when(is_tail)
        def _():
            acc_ref[...] += block_partial(True)

        @pl.when(jnp.logical_not(is_tail))
        def _():
            acc_ref[...] += block_partial(False)
    else:
        acc_ref[...] += block_partial(False)

    @pl.when(i == pl.num_programs(1) - 1)
    def _():
        o_ref[0, 0] = jnp.sum(acc_ref[...])   # tiny cross-lane reduce, epilogue only


def _lane_dense_2d(x):
    """Contiguous (rows, cols) view with cols a multiple of 128.

    Free reshape when a 128-multiple divides the element count; otherwise the
    flattened array is zero-padded up to a multiple of 128 (one extra HBM copy
    for awkward shapes only).  Zero padding is loss-neutral: it is applied
    identically to student and teacher, so it contributes 0 to sum((s-t)^2).
    """
    n = x.size
    for c in (512, 256, 128):
        if n % c == 0:
            return x.reshape(n // c, c)
    pad = (-n) % 128
    flat = jnp.pad(x.reshape(-1), (0, pad))
    return flat.reshape((n + pad) // 128, 128)


def mse_loss(out_s: jax.Array, out_t: jax.Array, *,
             target_block_bytes: int = 4 << 20) -> jax.Array:
    """Pallas TPU equivalent of F.mse_loss(out_s, out_t) (mean reduction)."""
    assert out_s.shape == out_t.shape, "shapes must match"
    total_elems = out_s.size

    s2 = _lane_dense_2d(out_s)
    t2 = _lane_dense_2d(out_t)
    rows, cols = s2.shape

    # ~4 MiB per input block: amortizes the ~0.35us per-step overhead even at
    # v7x HBM bandwidth; 2 inputs x 2 pipeline buffers x 4 MiB = 16 MiB plus a
    # tiny (8, cols) accumulator stays well under the 48 MiB scoped-VMEM limit
    # requested below (v5e/v6e: 128 MiB physical, v7x: 64 MiB physical).
    bytes_per_row = cols * s2.dtype.itemsize
    # Floor of 32 keeps the row-block a multiple of both 8 (f32) and 16 (bf16)
    # native sublane tiles; the full-dim clamp below is always layout-legal.
    tile_rows = max(32, (target_block_bytes // bytes_per_row) // 32 * 32)
    if tile_rows >= rows:
        tile_rows = rows                      # single block covering all rows
    num_blocks = pl.cdiv(rows, tile_rows)
    mask_tail = (rows % tile_rows) != 0
    fold = (tile_rows % 8 == 0)               # sublane-strip fold path
    acc_rows = 8 if fold else tile_rows

    # Parallel chunks: each emits its own partial sum.  Only exact splits are
    # used so every grid point maps to a real block (no redundant DMAs).
    n_par = 1
    for cand in (8, 6, 4, 3, 2):
        if num_blocks % cand == 0:
            n_par = cand
            break
    inner = num_blocks // n_par

    kernel = functools.partial(
        _mse_kernel, rows=rows, tile_rows=tile_rows, cols=cols,
        inner=inner, fold=fold, mask_tail=mask_tail)

    partial_sums = pl.pallas_call(
        kernel,
        out_shape=jax.ShapeDtypeStruct((n_par, 1), jnp.float32),
        grid_spec=pltpu.PrefetchScalarGridSpec(
            num_scalar_prefetch=0,
            grid=(n_par, inner),
            in_specs=[
                pl.BlockSpec((tile_rows, cols), lambda p, i: (p * inner + i, 0)),
                pl.BlockSpec((tile_rows, cols), lambda p, i: (p * inner + i, 0)),
            ],
            out_specs=pl.BlockSpec((1, 1), lambda p, i: (p, 0),
                                   memory_space=pltpu.SMEM),
            scratch_shapes=[pltpu.VMEM((acc_rows, cols), jnp.float32)],
        ),
        compiler_params=pltpu.CompilerParams(
            dimension_semantics=("parallel", "arbitrary"),
            vmem_limit_bytes=48 << 20,
        ),
    )(s2, t2)

    # Tiny final reduction + exact mean scale (Python-float reciprocal avoids
    # the f32 rounding of huge element counts).
    return jnp.sum(partial_sums) * (1.0 / total_elems)


if __name__ == "__main__":
    key = jax.random.PRNGKey(0)

    # Primary case: student / teacher logits, batch=16, num_classes=32.
    k_s, k_t = jax.random.split(key)
    out_s = jax.random.normal(k_s, (16, 32), dtype=jnp.float32)
    out_t = jax.random.normal(k_t, (16, 32), dtype=jnp.float32)
    loss = mse_loss(out_s, out_t)
    jax.block_until_ready(loss)
    ref = jnp.mean((out_s - out_t) ** 2)
    assert jnp.allclose(loss, ref, rtol=2e-5, atol=1e-6), (loss, ref)

    # Extra configs (tiny block sizes) exercising: multi-block accumulation,
    # parallel chunks, row-tail masking, the padded fallback and bf16 inputs.
    checks = [
        ((2048, 128), jnp.float32, 1 << 13),   # 16 blocks -> 8 chunks x 2
        ((640, 128),  jnp.float32, 1 << 13),   # 5 blocks  -> 1 chunk  x 5
        ((40, 512),   jnp.float32, 1 << 12),   # 2 blocks + row-tail mask
        ((37, 64),    jnp.float32, 1 << 12),   # padded fallback, single block
        ((80, 512),   jnp.bfloat16, 1 << 12),  # bf16 + row-tail mask
    ]
    for shape, dtype, tbb in checks:
        k_s, k_t, key = jax.random.split(key, 3)
        a = jax.random.normal(k_s, shape, dtype=jnp.float32).astype(dtype)
        b = jax.random.normal(k_t, shape, dtype=jnp.float32).astype(dtype)
        got = mse_loss(a, b, target_block_bytes=tbb)
        jax.block_until_ready(got)
        want = jnp.mean((a.astype(jnp.float32) - b.astype(jnp.float32)) ** 2)
        tol = 1e-3 if dtype == jnp.bfloat16 else 2e-5
        assert jnp.allclose(got, want, rtol=tol, atol=tol), (shape, got, want)

    print("KERNEL_OK")
</pallas_src>

<mosaic_0001>
module attributes {stable_mosaic.version = 11 : i64} {
  func.func @_mse_kernel(%arg0: i32, %arg1: i32, %arg2: memref<1x512xf32, #tpu.memory_space<vmem>>, %arg3: memref<1x512xf32, #tpu.memory_space<vmem>>, %arg4: memref<1x1xf32, #tpu.memory_space<smem>>, %arg5: memref<1x512xf32, #tpu.memory_space<vmem>>) attributes {dimension_semantics = [#tpu.dimension_semantics<parallel>, #tpu.dimension_semantics<arbitrary>], iteration_bounds = array<i64: 1, 1>, scalar_prefetch = 0 : i64, scratch_operands = 1 : i64, tpu.core_type = #tpu.core_type<tc>, window_params = [{transform_indices = @transform_0, window_bounds = array<i64: 1, 512>}, {transform_indices = @transform_1, window_bounds = array<i64: 1, 512>}, {transform_indices = @transform_2, window_bounds = array<i64: 1, 1>}]} {
    %c0_i32 = arith.constant 0 : i32
    %0 = arith.cmpi eq, %arg1, %c0_i32 : i32
    %1 = arith.extui %0 : i1 to i32
    %c0_i32_0 = arith.constant 0 : i32
    %2 = arith.cmpi ne, %1, %c0_i32_0 : i32
    scf.if %2 {
      %cst = arith.constant 0.000000e+00 : f32
      %13 = vector.broadcast %cst : f32 to vector<1x512xf32>
      %c0_10 = arith.constant 0 : index
      %c0_11 = arith.constant 0 : index
      %14 = vector.load %arg5[%c0_10, %c0_11] : memref<1x512xf32, #tpu.memory_space<vmem>>, vector<1x512xf32>
      tpu.vector_store %arg5[%c0_10, %c0_11], %13 {strides = array<i32>} : memref<1x512xf32, #tpu.memory_space<vmem>>, vector<1x512xf32>,
    } else {
    }
    %c0 = arith.constant 0 : index
    %c0_1 = arith.constant 0 : index
    %3 = vector.load %arg5[%c0, %c0_1] : memref<1x512xf32, #tpu.memory_space<vmem>>, vector<1x512xf32>
    %c0_2 = arith.constant 0 : index
    %c0_3 = arith.constant 0 : index
    %4 = vector.load %arg2[%c0_2, %c0_3] : memref<1x512xf32, #tpu.memory_space<vmem>>, vector<1x512xf32>
    %c0_4 = arith.constant 0 : index
    %c0_5 = arith.constant 0 : index
    %5 = vector.load %arg3[%c0_4, %c0_5] : memref<1x512xf32, #tpu.memory_space<vmem>>, vector<1x512xf32>
    %6 = arith.subf %4, %5 : vector<1x512xf32>
    %7 = arith.mulf %6, %6 : vector<1x512xf32>
    %8 = arith.addf %3, %7 : vector<1x512xf32>
    %c0_6 = arith.constant 0 : index
    %c0_7 = arith.constant 0 : index
    %9 = vector.load %arg5[%c0_6, %c0_7] : memref<1x512xf32, #tpu.memory_space<vmem>>, vector<1x512xf32>
    tpu.vector_store %arg5[%c0_6, %c0_7], %8 {strides = array<i32>} : memref<1x512xf32, #tpu.memory_space<vmem>>, vector<1x512xf32>,
    %c0_i32_8 = arith.constant 0 : i32
    %10 = arith.cmpi eq, %arg1, %c0_i32_8 : i32
    %11 = arith.extui %10 : i1 to i32
    %c0_i32_9 = arith.constant 0 : i32
    %12 = arith.cmpi ne, %11, %c0_i32_9 : i32
    scf.if %12 {
      %c0_10 = arith.constant 0 : index
      %c0_11 = arith.constant 0 : index
      %13 = vector.load %arg5[%c0_10, %c0_11] : memref<1x512xf32, #tpu.memory_space<vmem>>, vector<1x512xf32>
      %14 = vector.shape_cast %13 : vector<1x512xf32> to vector<1x1x512xf32>
      %cst = arith.constant dense<0.000000e+00> : vector<1xf32>
      %15 = vector.multi_reduction <add>, %14, %cst [1, 2] : vector<1x1x512xf32> to vector<1xf32>
      %16 = vector.shape_cast %15 : vector<1xf32> to vector<1x1x1xf32>
      %17 = vector.extract %16[0, 0, 0] : f32 from vector<1x1x1xf32>
      %c0_12 = arith.constant 0 : index
      %c0_13 = arith.constant 0 : index
      %18 = memref.load %arg4[%c0_12, %c0_13] : memref<1x1xf32, #tpu.memory_space<smem>>
      memref.store %17, %arg4[%c0_12, %c0_13] : memref<1x1xf32, #tpu.memory_space<smem>>
    } else {
    }
    return
  }
  func.func @transform_0(%arg0: i32, %arg1: i32) -> (i32, i32) {
    %c1_i32 = arith.constant 1 : i32
    %0 = arith.muli %arg0, %c1_i32 : i32
    %1 = arith.addi %0, %arg1 : i32
    %c0_i32 = arith.constant 0 : i32
    %c0_i32_0 = arith.constant 0 : i32
    return %1, %c0_i32 : i32, i32
  }
  func.func @transform_1(%arg0: i32, %arg1: i32) -> (i32, i32) {
    %c1_i32 = arith.constant 1 : i32
    %0 = arith.muli %arg0, %c1_i32 : i32
    %1 = arith.addi %0, %arg1 : i32
    %c0_i32 = arith.constant 0 : i32
    %c0_i32_0 = arith.constant 0 : i32
    return %1, %c0_i32 : i32, i32
  }
  func.func @transform_2(%arg0: i32, %arg1: i32) -> (i32, i32) {
    %c0_i32 = arith.constant 0 : i32
    %c0_i32_0 = arith.constant 0 : i32
    return %arg0, %c0_i32 : i32, i32
  }
}

</mosaic_0001>

<bundles_post_ra>
// kernel: tpu_custom_call.1
= control target key start
LH: loop header
LB: loop body
LE: loop exit
PB: predicated region body
PF: predicated region fallthrough
CT: control target
= control target key end

     0   :  { %7 = vsyncpa [#allocation4], 0  ;;  %s246_s0 = inlined_call_operand.hbm [shape: f32[1,512], index: 0, kind: input, shape index: {}]   ;;  %s247_s1 = inlined_call_operand.hbm [shape: f32[1,512], index: 1, kind: input, shape index: {}]   ;;  %s248_s2 = inlined_call_operand.hbm [shape: f32[1,1], index: 2, kind: output, shape index: {}]  }
   0x1   :  { %8 = vsyncpa [#allocation7], 0 }
   0x2   :  { %9 = vsyncpa [#allocation5], 0  ;;  %s191_s9 = smov [#allocation3]   ;;  %s192_s11 = smov [#allocation6]  }
   0x3   :  { %s20_s10 = sshll.u32 %s191_s9, 4  ;;  %s34_s12 = sshll.u32 %s192_s11, 4  ;;  %s21_s10 = int_to_ptr.vmem [resolvable:$true] %s20_s10  ;;  %s35_s12 = int_to_ptr.vmem [resolvable:$true] %s34_s12 }
   0x4   :  { %s131_s15 = scalar_lea.hbm %s246_s0, 64 }
   0x5   :  { %p132_p0 = scmp.ne.s32.totalorder %s246_s0, %s131_s15  ;;  %p135_p1 = scmp.lt.u32.totalorder %s131_s15, %s246_s0 }
   0x7   :  { %p137_p2 = pnand %p135_p1, %p132_p0 }
   0x9   :  { %140 = shalt.err (!%p137_p2)
}
   0xa   :  { %s141_s20 = scalar_lea.vmem %s21_s10, 64  ;;  %p146_p4 = scmp.lt.s32.totalorder %s21_s10, %s21_s10 }
   0xb   :  { %p142_p3 = scmp.ne.s32.totalorder %s21_s10, %s141_s20  ;;  %p147_p5 = scmp.lt.s32.totalorder %s141_s20, %s141_s20 }
   0xd   :  { %p148_p6 = por %p147_p5, %p146_p4 }
   0xf   :  { %p149_p7 = pnand %p148_p6, %p142_p3 }
  0x11   :  { %152 = shalt.err (!%p149_p7)
}
  0x12   :  { %23 = dma.hbm_to_vmem [thread:$0]  %s246_s0, 64, %s21_s10, [#allocation4]  }
  0x13   :  { %s153_s25 = scalar_lea.hbm %s247_s1, 64 }
  0x14   :  { %p154_p8 = scmp.ne.s32.totalorder %s247_s1, %s153_s25  ;;  %p157_p9 = scmp.lt.u32.totalorder %s153_s25, %s247_s1 }
  0x16   :  { %p159_p10 = pnand %p157_p9, %p154_p8 }
  0x18   :  { %162 = shalt.err (!%p159_p10)
}
  0x19   :  { %s163_s30 = scalar_lea.vmem %s35_s12, 64  ;;  %p168_p12 = scmp.lt.s32.totalorder %s35_s12, %s35_s12 }
  0x1a   :  { %p164_p11 = scmp.ne.s32.totalorder %s35_s12, %s163_s30  ;;  %p169_p13 = scmp.lt.s32.totalorder %s163_s30, %s163_s30 }
  0x1c   :  { %p170_p0 = por %p169_p13, %p168_p12 }
  0x1e   :  { %p171_p1 = pnand %p170_p0, %p164_p11 }
  0x20   :  { %174 = shalt.err (!%p171_p1)
}
  0x21   :  { %37 = dma.hbm_to_vmem [thread:$0]  %s247_s1, 64, %s35_s12, [#allocation7]  }
  0x22   :  { %185 = dma.done.wait [#allocation4], 64  }
  0x23   :  { %186 = vsyncadd [#allocation4], 4294967232 }
  0x24   :  { %187 = dma.done.wait [#allocation7], 64  }
  0x25   :  { %188 = vsyncadd [#allocation7], 4294967232  ;;  %v50_v0 = vlaneseq  ;;  %v193_v1 = vmov 0.0   ;;  %v56_v2 = vld [vmem:[#allocation3] sm:$0xf]  ;;  %vm91_vm1 = vcmask 1040384  }
  0x26   :  { %v57_v3 = vld [vmem:[#allocation6] sm:$0xf]  ;;  %s175_s6 = scalar_lea.hbm %s248_s2, 16 }
  0x27   :  { %vm52_vm0 = vcmp.lt.s32.totalorder %v50_v0, 512  ;;  %v58_v4 = vsub.f32 %v56_v2, %v57_v3  ;;  %v72_v8 = vshrl.u32 %v50_v0, 7  ;;  %p176_p2 = scmp.ne.s32.totalorder %s248_s2, %s175_s6  ;;  %p179_p3 = scmp.lt.u32.totalorder %s175_s6, %s248_s2 }
  0x28   :  { %54 = vst.msk [vmem:[#allocation2] sm:$0xf] %vm52_vm0, %v193_v1 }
  0x29   :  { %v59_v6 = vmul.f32 %v58_v4, %v58_v4  ;;  %v73_v9 = vsub.s32 0, %v72_v8  ;;  %v77_v10 = vsub.s32 1, %v72_v8  ;;  %v81_v11 = vsub.s32 2, %v72_v8  ;;  %p181_p4 = pnand %p179_p3, %p176_p2 }
  0x2a   :  { %v85_v12 = vsub.s32 3, %v72_v8 }
  0x2f   :  { %v55_v5 = vld [vmem:[#allocation2] sm:$0xf] }
  0x30   :  { %v60_v7 = vadd.f32 %v59_v6, %v55_v5 }
  0x32   :  { %65 = vst.msk [vmem:[#allocation2] sm:$0xf] %vm52_vm0, %v60_v7 }
  0x39   :  { %v69_v13 = vld [vmem:[#allocation2] sm:$0xf] }
  0x3a   :  { %v74_v14 = vrot.slane %v69_v13, %v73_v9  ;;  %v78_v15 = vrot.slane %v69_v13, %v77_v10  ;;  %v82_v16 = vrot.slane %v69_v13, %v81_v11  ;;  %v86_v17 = vrot.slane %v69_v13, %v85_v12 }
  0x3c   :  { %v92_v18 = vsel %vm91_vm1, %v74_v14, 0.0  ;;  %v93_v19 = vsel %vm91_vm1, %v78_v15, 0.0  ;;  %v95_v20 = vsel %vm91_vm1, %v82_v16, 0.0  ;;  %v97_v22 = vsel %vm91_vm1, %v86_v17, 0.0 }
  0x3d   :  { %v94_v21 = vadd.f32 %v93_v19, %v92_v18 }
  0x3f   :  { %v96_v23 = vadd.f32 %v95_v20, %v94_v21 }
  0x41   :  { %v98_v24 = vadd.f32 %v97_v22, %v96_v23 }
  0x43   :  { %99 = vadd.xlane.f32.xlu0 %v98_v24 }
  0xd0   :  { %v100_v25 = vpop.xlane.xlu0 %99 }
  0xd1   :  { %v101_v26 = vrot.slane %v100_v25, 4 }
  0xd3   :  { %v102_v27 = vadd.f32 %v101_v26, %v100_v25 }
  0xd5   :  { %v103_v28 = vrot.slane %v102_v27, 2 }
  0xd7   :  { %v104_v29 = vadd.f32 %v103_v28, %v102_v27 }
  0xd9   :  { %v105_v30 = vrot.slane %v104_v29, 1 }
  0xdb   :  { %v106_v31 = vadd.f32 %v105_v30, %v104_v29 }
  0xdd   :  { %125 = vpush %v106_v31 }
 0x10e   :  { %s126_s1 = spop %125 }
 0x10f   :  { %109 = sst [smem:[#allocation8]] %s126_s1 }
 0x110   :  { %184 = shalt.err (!%p181_p4)
}
 0x111   :  { %s194_s11 = smov [#allocation8]  }
 0x112   :  { %117 = dma.smem_to_hbm %s194_s11, 16, %s248_s2, [#allocation5]  }
 0x113   :  { %189 = dma.done.wait [#allocation5], 16  }
 0x114   :  { %190 = vsyncadd [#allocation5], 4294967280 }
 0x115   :  { %121 = sfence }
 0x116   :  { %122 = vsyncpa [#allocation4], 1 }
 0x117   :  { %123 = vsyncpa [#allocation7], 1 }
 0x118   :  { %124 = vsyncpa [#allocation5], 1 }

</bundles_post_ra>
